<compile_context>
chip_gen: v6e
topology: v6e:2x2x1
jax: 0.10.0
libtpu: 0.0.40
codegen_flags: <defaults>
</compile_context>

<pallas_src>
import functools

import jax
import jax.numpy as jnp
from jax.experimental import pallas as pl
from jax.experimental.pallas import tpu as pltpu


def _round_up(x, m):
    return ((x + m - 1) // m) * m


def _pick_batch_tile(batch, batch_tile):
    """Pick a batch tile (multiple of 8 sublanes) minimizing padded rows,
    breaking ties toward the largest tile (fewer grid steps)."""
    limit = min(_round_up(batch_tile, 8), _round_up(batch, 8))
    best = None  # (padded_batch, -tile, tile)
    for tb in sorted({limit, 512, 256, 128, 64, 32, 16, 8}):
        if tb > limit:
            continue
        bp = _round_up(batch, tb)
        key = (bp, -tb)
        if best is None or key < best[0]:
            best = (key, tb, bp)
    return best[1], best[2]


def _two_mlp_kernel(alpha_ref, x_ref, w1_ref, b1_ref, w2_ref, b2_ref, o_ref):
    """Fused MLP hot path: matmul -> bias -> PReLU -> matmul -> bias.

    alpha_ref: (1, 1) f32 in SMEM (single shared PReLU slope).
    x_ref:     (TB, Dip)  VMEM tile of the input batch, bf16 (Dip % 128 == 0).
    w1_ref:    (Dip, Hp)  VMEM, bf16, resident across the grid (single-buffered).
    b1_ref:    (1, Hp)    VMEM, f32.
    w2_ref:    (Hp, Dp)   VMEM, bf16, resident across the grid (single-buffered).
    b2_ref:    (1, Dp)    VMEM, f32.
    o_ref:     (TB, Dp)   VMEM output tile (lane-dense: Dp % 256 == 0).
    """
    # First linear layer: bf16 operands on the MXU, f32 accumulation.
    h = jnp.dot(x_ref[...], w1_ref[...], preferred_element_type=jnp.float32)
    h = h + b1_ref[...]

    # PReLU with a single learnable slope (num_parameters=1), f32 on the VPU.
    alpha = alpha_ref[0, 0]
    h = jnp.where(h > 0, h, alpha * h)

    # Second linear layer: cast activation to bf16 for the MXU, f32 accum.
    out = jnp.dot(h.astype(jnp.bfloat16), w2_ref[...],
                  preferred_element_type=jnp.float32)
    out = out + b2_ref[...]

    o_ref[...] = out.astype(o_ref.dtype)


@functools.partial(jax.jit, static_argnames=("batch_tile", "out_dtype"))
def two_mlp_forward(x, w1, b1, w2, b2, alpha, *, batch_tile=512,
                    out_dtype=jnp.float32):
    """x: (B, D_in). w1: (D_in, H). b1: (H,). w2: (H, D_out). b2: (D_out,).
    alpha: scalar PReLU slope (nn.PReLU(1)). Returns (B, D_out) in `out_dtype`.

    Feature dims are zero-padded (D_in -> 128-multiple, H / D_out -> 256-multiple)
    and the batch is padded to the adaptively chosen tile; padding is sliced off
    before returning and contributes exact zeros through bias/PReLU/matmul.
    """
    B, d_in = x.shape
    h_dim = w1.shape[1]
    d_out = w2.shape[1]
    assert w1.shape[0] == d_in and w2.shape[0] == h_dim
    # Kernel implements nn.PReLU(num_parameters=1); a per-channel alpha would
    # silently be wrong, so guard it.
    assert jnp.asarray(alpha).size == 1, "expected a single shared PReLU slope"

    # Lane-dense padding. 256-multiples on the feature dims fill the full
    # 2x256x256 MXU width on v6e/v7x (harmless on v5e's 4x128x128).
    dip = _round_up(d_in, 128)
    hp = _round_up(h_dim, 256)
    dp = _round_up(d_out, 256)

    # Adaptive batch tile (multiple of 8 sublanes, minimal padding).
    tb, bp = _pick_batch_tile(B, batch_tile)

    x_p = jnp.pad(x.astype(jnp.bfloat16), ((0, bp - B), (0, dip - d_in)))
    w1_p = jnp.pad(w1.astype(jnp.bfloat16), ((0, dip - d_in), (0, hp - h_dim)))
    b1_p = jnp.pad(b1.astype(jnp.float32), ((0, hp - h_dim),)).reshape(1, hp)
    w2_p = jnp.pad(w2.astype(jnp.bfloat16),
                   ((0, hp - h_dim), (0, dp - d_out)))
    b2_p = jnp.pad(b2.astype(jnp.float32), ((0, dp - d_out),)).reshape(1, dp)
    alpha_2d = jnp.asarray(alpha, jnp.float32).reshape(1, 1)

    grid = (bp // tb,)
    out_bytes = jnp.dtype(out_dtype).itemsize

    # Explicit VMEM budget: double-buffered x/out tiles, single-buffered
    # resident weights/biases, plus the (tb, hp) f32 intermediate and its bf16
    # copy; 1.5x headroom + 2 MiB, clamped to a sane range.
    vmem_bytes = (2 * tb * dip * 2          # x tile, 2 buffers, bf16
                  + 2 * tb * dp * out_bytes  # out tile, 2 buffers
                  + dip * hp * 2 + hp * 4    # w1 + b1, single buffer
                  + hp * dp * 2 + dp * 4     # w2 + b2, single buffer
                  + tb * hp * 6)             # f32 intermediate + bf16 cast
    vmem_limit = int(min(max(vmem_bytes * 3 // 2 + (2 << 20), 16 << 20),
                         100 << 20))

    flops = 2 * bp * (dip * hp + hp * dp)
    bytes_accessed = (x_p.size * 2 + w1_p.size * 2 + w2_p.size * 2
                      + b1_p.size * 4 + b2_p.size * 4 + bp * dp * out_bytes)

    # Resident (constant index_map) operands: single-buffered — never
    # re-fetched, so the second pipeline buffer is pure VMEM waste.
    def _resident(shape):
        return pl.BlockSpec(shape, lambda i: (0,) * len(shape),
                            pipeline_mode=pl.Buffered(1))

    out_p = pl.pallas_call(
        _two_mlp_kernel,
        out_shape=jax.ShapeDtypeStruct((bp, dp), out_dtype),
        grid_spec=pltpu.PrefetchScalarGridSpec(
            num_scalar_prefetch=0,
            grid=grid,
            in_specs=[
                # alpha: tiny scalar in SMEM, same block every step.
                pl.BlockSpec((1, 1), lambda i: (0, 0),
                             memory_space=pltpu.MemorySpace.SMEM),
                # x: tiled over the batch dimension (double-buffered pipeline).
                pl.BlockSpec((tb, dip), lambda i: (i, 0)),
                # weights / biases: full padded arrays, resident across grid.
                _resident((dip, hp)),
                _resident((1, hp)),
                _resident((hp, dp)),
                _resident((1, dp)),
            ],
            out_specs=pl.BlockSpec((tb, dp), lambda i: (i, 0)),
        ),
        compiler_params=pltpu.CompilerParams(
            # Batch loop shards across TensorCores on megacore parts.
            dimension_semantics=("parallel",),
            vmem_limit_bytes=vmem_limit,
        ),
        cost_estimate=pl.CostEstimate(
            flops=flops, transcendentals=0, bytes_accessed=bytes_accessed),
    )(alpha_2d, x_p, w1_p, b1_p, w2_p, b2_p)

    return out_p[:B, :d_out]


def init_two_mlp_params(key, input_size, output_size, hidden_size=512):
    """Deterministic init mimicking nn.Linear.reset_parameters
    (U(-1/sqrt(fan_in), 1/sqrt(fan_in)) for weights & biases) and
    nn.PReLU(1) default alpha=0.25. Weights are stored (in, out)."""
    k1, k2, k3, k4 = jax.random.split(key, 4)
    bound1 = 1.0 / jnp.sqrt(jnp.float32(input_size))
    bound2 = 1.0 / jnp.sqrt(jnp.float32(hidden_size))
    w1 = jax.random.uniform(k1, (input_size, hidden_size), jnp.float32,
                            -bound1, bound1)
    b1 = jax.random.uniform(k2, (hidden_size,), jnp.float32, -bound1, bound1)
    w2 = jax.random.uniform(k3, (hidden_size, output_size), jnp.float32,
                            -bound2, bound2)
    b2 = jax.random.uniform(k4, (output_size,), jnp.float32, -bound2, bound2)
    alpha = jnp.float32(0.25)
    return w1, b1, w2, b2, alpha


def two_mlp_reference(x, w1, b1, w2, b2, alpha):
    h = x @ w1 + b1
    h = jnp.where(h > 0, h, alpha * h)
    return h @ w2 + b2


if __name__ == "__main__":
    # Small shapes consistent with Two_MLP(input_size, output_size, hidden_size).
    batch, input_size, hidden_size, output_size = 8, 32, 64, 16

    key = jax.random.PRNGKey(0)
    kx, kp = jax.random.split(key)
    x = jax.random.normal(kx, (batch, input_size), jnp.float32)
    w1, b1, w2, b2, alpha = init_two_mlp_params(
        kp, input_size, output_size, hidden_size)

    out = two_mlp_forward(x, w1, b1, w2, b2, alpha)
    out = jax.block_until_ready(out)

    ref = two_mlp_reference(x, w1, b1, w2, b2, alpha)
    assert out.shape == (batch, output_size)
    # bf16 matmul operands vs. f32 reference -> loosened tolerances.
    assert jnp.allclose(out, ref, atol=3e-2, rtol=3e-2), "mismatch vs reference"

    print("KERNEL_OK")
</pallas_src>

<mosaic_0001>
module attributes {stable_mosaic.version = 11 : i64} {
  func.func @_two_mlp_kernel(%arg0: i32, %arg1: memref<1x1xf32, #tpu.memory_space<smem>>, %arg2: memref<8x128xbf16, #tpu.memory_space<vmem>>, %arg3: memref<128x256xbf16, #tpu.memory_space<vmem>>, %arg4: memref<1x256xf32, #tpu.memory_space<vmem>>, %arg5: memref<256x256xbf16, #tpu.memory_space<vmem>>, %arg6: memref<1x256xf32, #tpu.memory_space<vmem>>, %arg7: memref<8x256xf32, #tpu.memory_space<vmem>>) attributes {dimension_semantics = [#tpu.dimension_semantics<parallel>], iteration_bounds = array<i64: 1>, scalar_prefetch = 0 : i64, scratch_operands = 0 : i64, tpu.core_type = #tpu.core_type<tc>, window_params = [{transform_indices = @transform_0, window_bounds = array<i64: 1, 1>}, {transform_indices = @transform_1, window_bounds = array<i64: 8, 128>}, {pipeline_mode = #tpu.pipeline_mode<synchronous>, transform_indices = @transform_2, window_bounds = array<i64: 128, 256>}, {pipeline_mode = #tpu.pipeline_mode<synchronous>, transform_indices = @transform_3, window_bounds = array<i64: 1, 256>}, {pipeline_mode = #tpu.pipeline_mode<synchronous>, transform_indices = @transform_4, window_bounds = array<i64: 256, 256>}, {pipeline_mode = #tpu.pipeline_mode<synchronous>, transform_indices = @transform_5, window_bounds = array<i64: 1, 256>}, {transform_indices = @transform_6, window_bounds = array<i64: 8, 256>}]} {
    %c0 = arith.constant 0 : index
    %c0_0 = arith.constant 0 : index
    %0 = vector.load %arg2[%c0, %c0_0] : memref<8x128xbf16, #tpu.memory_space<vmem>>, vector<8x128xbf16>
    %c0_1 = arith.constant 0 : index
    %c0_2 = arith.constant 0 : index
    %1 = vector.load %arg3[%c0_1, %c0_2] : memref<128x256xbf16, #tpu.memory_space<vmem>>, vector<128x256xbf16>
    %cst = arith.constant dense<0.000000e+00> : vector<8x256xf32>
    %2 = tpu.matmul %0, %1, %cst {dimension_numbers = #tpu.dot_dimension_numbers<[1], [0], [0], [1], [0, 0, 1, 1], [], []>} : vector<8x128xbf16>, vector<128x256xbf16>, vector<8x256xf32> -> vector<8x256xf32>
    %c0_3 = arith.constant 0 : index
    %c0_4 = arith.constant 0 : index
    %3 = vector.load %arg4[%c0_3, %c0_4] : memref<1x256xf32, #tpu.memory_space<vmem>>, vector<1x256xf32>
    %4 = vector.broadcast %3 : vector<1x256xf32> to vector<8x256xf32>
    %5 = arith.addf %2, %4 : vector<8x256xf32>
    %c0_5 = arith.constant 0 : index
    %c0_6 = arith.constant 0 : index
    %6 = memref.load %arg1[%c0_5, %c0_6] : memref<1x1xf32, #tpu.memory_space<smem>>
    %cst_7 = arith.constant 0.000000e+00 : f32
    %7 = vector.broadcast %cst_7 : f32 to vector<8x256xf32>
    %8 = arith.cmpf ogt, %5, %7 : vector<8x256xf32>
    %9 = vector.broadcast %6 : f32 to vector<8x256xf32>
    %10 = arith.mulf %9, %5 : vector<8x256xf32>
    %11 = arith.select %8, %5, %10 : vector<8x256xi1>, vector<8x256xf32>
    %12 = arith.truncf %11 : vector<8x256xf32> to vector<8x256xbf16>
    %c0_8 = arith.constant 0 : index
    %c0_9 = arith.constant 0 : index
    %13 = vector.load %arg5[%c0_8, %c0_9] : memref<256x256xbf16, #tpu.memory_space<vmem>>, vector<256x256xbf16>
    %cst_10 = arith.constant dense<0.000000e+00> : vector<8x256xf32>
    %14 = tpu.matmul %12, %13, %cst_10 {dimension_numbers = #tpu.dot_dimension_numbers<[1], [0], [0], [1], [0, 0, 1, 1], [], []>} : vector<8x256xbf16>, vector<256x256xbf16>, vector<8x256xf32> -> vector<8x256xf32>
    %c0_11 = arith.constant 0 : index
    %c0_12 = arith.constant 0 : index
    %15 = vector.load %arg6[%c0_11, %c0_12] : memref<1x256xf32, #tpu.memory_space<vmem>>, vector<1x256xf32>
    %16 = vector.broadcast %15 : vector<1x256xf32> to vector<8x256xf32>
    %17 = arith.addf %14, %16 : vector<8x256xf32>
    %c0_13 = arith.constant 0 : index
    %c0_14 = arith.constant 0 : index
    %18 = vector.load %arg7[%c0_13, %c0_14] : memref<8x256xf32, #tpu.memory_space<vmem>>, vector<8x256xf32>
    tpu.vector_store %arg7[%c0_13, %c0_14], %17 {strides = array<i32>} : memref<8x256xf32, #tpu.memory_space<vmem>>, vector<8x256xf32>,
    return
  }
  func.func @transform_0(%arg0: i32) -> (i32, i32) {
    %c0_i32 = arith.constant 0 : i32
    %c0_i32_0 = arith.constant 0 : i32
    %c0_i32_1 = arith.constant 0 : i32
    return %c0_i32, %c0_i32_0 : i32, i32
  }
  func.func @transform_1(%arg0: i32) -> (i32, i32) {
    %c0_i32 = arith.constant 0 : i32
    %c0_i32_0 = arith.constant 0 : i32
    return %arg0, %c0_i32 : i32, i32
  }
  func.func @transform_2(%arg0: i32) -> (i32, i32) {
    %c0_i32 = arith.constant 0 : i32
    %c0_i32_0 = arith.constant 0 : i32
    %c0_i32_1 = arith.constant 0 : i32
    return %c0_i32, %c0_i32_0 : i32, i32
  }
  func.func @transform_3(%arg0: i32) -> (i32, i32) {
    %c0_i32 = arith.constant 0 : i32
    %c0_i32_0 = arith.constant 0 : i32
    %c0_i32_1 = arith.constant 0 : i32
    return %c0_i32, %c0_i32_0 : i32, i32
  }
  func.func @transform_4(%arg0: i32) -> (i32, i32) {
    %c0_i32 = arith.constant 0 : i32
    %c0_i32_0 = arith.constant 0 : i32
    %c0_i32_1 = arith.constant 0 : i32
    return %c0_i32, %c0_i32_0 : i32, i32
  }
  func.func @transform_5(%arg0: i32) -> (i32, i32) {
    %c0_i32 = arith.constant 0 : i32
    %c0_i32_0 = arith.constant 0 : i32
    %c0_i32_1 = arith.constant 0 : i32
    return %c0_i32, %c0_i32_0 : i32, i32
  }
  func.func @transform_6(%arg0: i32) -> (i32, i32) {
    %c0_i32 = arith.constant 0 : i32
    %c0_i32_0 = arith.constant 0 : i32
    return %arg0, %c0_i32 : i32, i32
  }
}

</mosaic_0001>

<bundles_post_ra>
// kernel: two_mlp_forward.1
= control target key start
LH: loop header
LB: loop body
LE: loop exit
PB: predicated region body
PF: predicated region fallthrough
CT: control target
= control target key end

     0   :  { %v557_v1 = vmov 0   ;;  %v44_v50 = vlaneseq  ;;  %s755_s2 = inlined_call_operand.vmem [shape: bf16[128,256], index: 2, kind: input, shape index: {}]   ;;  %s756_s4 = inlined_call_operand.vmem [shape: bf16[256,256], index: 4, kind: input, shape index: {}]   ;;  %s757_s1 = inlined_call_operand.vmem [shape: bf16[8,128], index: 1, kind: input, shape index: {}]   ;;  %s758_s3 = inlined_call_operand.vmem [shape: f32[1,256], index: 3, kind: input, shape index: {}]   ;;  %s759_s0 = inlined_call_operand.<no memory space> [shape: f32[1,1], index: 0, kind: input, shape index: {}]   ;;  %s760_s5 = inlined_call_operand.vmem [shape: f32[1,256], index: 5, kind: input, shape index: {}]   ;;  %s761_s6 = inlined_call_operand.vmem [shape: f32[8,256], index: 6, kind: output, shape index: {}]  }
   0x1   :  { %v485_v0 = vld [vmem:[%s755_s2 + $0x74] ss:$8 sps:$4 sm:$0xff]   ;;  %166 = vmatprep.mubr.bf16.mxu0 %v557_v1  ;;  %v487_v2 = vld [vmem:[%s755_s2 + $0x70] ss:$8 sps:$4 sm:$0xff]   ;;  %v488_v3 = vld [vmem:[%s755_s2 + $0x64] ss:$8 sps:$4 sm:$0xff]   ;;  %v178_v58 = vstv %s759_s0 }
   0x2   :  { %134 = vmatprep.subr.bf16.mxu0 %v485_v0  ;;  %v490_v4 = vld [vmem:[%s755_s2 + $0x60] ss:$8 sps:$4 sm:$0xff]   ;;  %v491_v5 = vld [vmem:[%s755_s2 + $0x54] ss:$8 sps:$4 sm:$0xff]   ;;  %v493_v6 = vld [vmem:[%s755_s2 + $0x50] ss:$8 sps:$4 sm:$0xff]  }
   0x3   :  { %135 = vmatpush1.bf16.msra.mxu0 %v487_v2  ;;  %v494_v7 = vld [vmem:[%s755_s2 + $0x44] ss:$8 sps:$4 sm:$0xff]   ;;  %v496_v8 = vld [vmem:[%s755_s2 + $0x40] ss:$8 sps:$4 sm:$0xff]   ;;  %v497_v9 = vld [vmem:[%s755_s2 + $0x34] ss:$8 sps:$4 sm:$0xff]  }
   0x4   :  { %136 = vmatprep.subr.bf16.mxu0 %v488_v3  ;;  %v509_v10 = vld [vmem:[%s756_s4 + $0x74] ss:$8 sps:$4 sm:$0xff]   ;;  %v511_v11 = vld [vmem:[%s756_s4 + $0x70] ss:$8 sps:$4 sm:$0xff]   ;;  %v512_v12 = vld [vmem:[%s756_s4 + $0x64] ss:$8 sps:$4 sm:$0xff]  }
   0x5   :  { %389 = vmatprep.subr.bf16.mxu1 %v509_v10  ;;  %v499_v13 = vld [vmem:[%s755_s2 + $0x30] ss:$8 sps:$4 sm:$0xff]   ;;  %v514_v14 = vld [vmem:[%s756_s4 + $0x60] ss:$8 sps:$4 sm:$0xff]   ;;  %v515_v15 = vld [vmem:[%s756_s4 + $0x54] ss:$8 sps:$4 sm:$0xff]  }
   0x6   :  { %390 = vmatpush1.bf16.msra.mxu1 %v511_v11  ;;  %v500_v16 = vld [vmem:[%s755_s2 + $0x24] ss:$8 sps:$4 sm:$0xff]   ;;  %v502_v17 = vld [vmem:[%s755_s2 + $0x20] ss:$8 sps:$4 sm:$0xff]   ;;  %v517_v18 = vld [vmem:[%s756_s4 + $0x50] ss:$8 sps:$4 sm:$0xff]  }
   0x7   :  { %137 = vmatpush1.bf16.msra.mxu0 %v490_v4  ;;  %391 = vmatprep.subr.bf16.mxu1 %v512_v12  ;;  %v518_v19 = vld [vmem:[%s756_s4 + $0x44] ss:$8 sps:$4 sm:$0xff]   ;;  %v503_v20 = vld [vmem:[%s755_s2 + $0x14] ss:$8 sps:$4 sm:$0xff]   ;;  %v505_v21 = vld [vmem:[%s755_s2 + $0x10] ss:$8 sps:$4 sm:$0xff]  }
   0x8   :  { %138 = vmatprep.subr.bf16.mxu0 %v491_v5  ;;  %v520_v22 = vld [vmem:[%s756_s4 + $0x40] ss:$8 sps:$4 sm:$0xff]   ;;  %v521_v23 = vld [vmem:[%s756_s4 + $0x34] ss:$8 sps:$4 sm:$0xff]   ;;  %v506_v24 = vld [vmem:[%s755_s2 + $0x4] ss:$8 sps:$4 sm:$0xff]  }
   0x9   :  { %v508_v25 = vld [vmem:[%s755_s2] ss:$8 sps:$4 sm:$0xff]   ;;  %v523_v26 = vld [vmem:[%s756_s4 + $0x30] ss:$8 sps:$4 sm:$0xff]   ;;  %v524_v27 = vld [vmem:[%s756_s4 + $0x24] ss:$8 sps:$4 sm:$0xff]  }
   0xa   :  { %392 = vmatpush1.bf16.msra.mxu1 %v514_v14  ;;  %v526_v28 = vld [vmem:[%s756_s4 + $0x20] ss:$8 sps:$4 sm:$0xff]   ;;  %v527_v30 = vld [vmem:[%s756_s4 + $0x14] ss:$8 sps:$4 sm:$0xff]   ;;  %v529_v31 = vld [vmem:[%s756_s4 + $0x10] ss:$8 sps:$4 sm:$0xff]  }
   0xb   :  { %139 = vmatpush1.bf16.msra.mxu0 %v493_v6  ;;  %393 = vmatprep.subr.bf16.mxu1 %v515_v15  ;;  %v25_v29 = vld [vmem:[%s757_s1] sm:$0xf]  ;;  %v530_v32 = vld [vmem:[%s756_s4 + $0x4] ss:$8 sps:$4 sm:$0xff]   ;;  %v533_v34 = vld [vmem:[%s756_s4 + $0xf4] ss:$8 sps:$4 sm:$0xff]  }
   0xc   :  { %140 = vmatprep.subr.bf16.mxu0 %v494_v7  ;;  %v532_v33 = vld [vmem:[%s756_s4] ss:$8 sps:$4 sm:$0xff]   ;;  %v535_v35 = vld [vmem:[%s756_s4 + $0xf0] ss:$8 sps:$4 sm:$0xff]   ;;  %v536_v36 = vld [vmem:[%s756_s4 + $0xe4] ss:$8 sps:$4 sm:$0xff]  }
   0xd   :  { %v538_v37 = vld [vmem:[%s756_s4 + $0xe0] ss:$8 sps:$4 sm:$0xff]   ;;  %v539_v38 = vld [vmem:[%s756_s4 + $0xd4] ss:$8 sps:$4 sm:$0xff]   ;;  %v541_v39 = vld [vmem:[%s756_s4 + $0xd0] ss:$8 sps:$4 sm:$0xff]  }
   0xe   :  { %394 = vmatpush1.bf16.msra.mxu1 %v517_v18  ;;  %v542_v40 = vld [vmem:[%s756_s4 + $0xc4] ss:$8 sps:$4 sm:$0xff]   ;;  %v544_v41 = vld [vmem:[%s756_s4 + $0xc0] ss:$8 sps:$4 sm:$0xff]   ;;  %v545_v42 = vld [vmem:[%s756_s4 + $0xb4] ss:$8 sps:$4 sm:$0xff]  }
   0xf   :  { %141 = vmatpush1.bf16.msra.mxu0 %v496_v8  ;;  %395 = vmatprep.subr.bf16.mxu1 %v518_v19  ;;  %v547_v43 = vld [vmem:[%s756_s4 + $0xb0] ss:$8 sps:$4 sm:$0xff]   ;;  %v548_v44 = vld [vmem:[%s756_s4 + $0xa4] ss:$8 sps:$4 sm:$0xff]   ;;  %v550_v45 = vld [vmem:[%s756_s4 + $0xa0] ss:$8 sps:$4 sm:$0xff]  }
  0x10   :  { %142 = vmatprep.subr.bf16.mxu0 %v497_v9  ;;  %v551_v46 = vld [vmem:[%s756_s4 + $0x94] ss:$8 sps:$4 sm:$0xff]   ;;  %v553_v47 = vld [vmem:[%s756_s4 + $0x90] ss:$8 sps:$4 sm:$0xff]   ;;  %v554_v48 = vld [vmem:[%s756_s4 + $0x84] ss:$8 sps:$4 sm:$0xff]  }
  0x11   :  { %v556_v49 = vld [vmem:[%s756_s4 + $0x80] ss:$8 sps:$4 sm:$0xff]   ;;  %v45_v51 = vshrl.u32 %v44_v50, 7 }
  0x12   :  { %396 = vmatpush1.bf16.msra.mxu1 %v520_v22  ;;  %v42_v53 = vld [vmem:[%s758_s3] sm:$0x3] }
  0x13   :  { %143 = vmatpush1.bf16.msra.mxu0 %v499_v13  ;;  %397 = vmatprep.subr.bf16.mxu1 %v521_v23  ;;  %v46_v52 = vsub.s32 0, %v45_v51  ;;  %v50_v54 = vsub.s32 1, %v45_v51  ;;  %v217_v6 = vld [vmem:[%s760_s5] sm:$0x3] }
  0x14   :  { %144 = vmatprep.subr.bf16.mxu0 %v500_v16 }
  0x15   :  { %v47_v55 = vrot.slane %v42_v53, %v46_v52  ;;  %v51_v56 = vrot.slane %v42_v53, %v50_v54  ;;  %v222_v7 = vrot.slane %v217_v6, %v46_v52  ;;  %v226_v8 = vrot.slane %v217_v6, %v50_v54 }
  0x16   :  { %398 = vmatpush1.bf16.msra.mxu1 %v523_v26 }
  0x17   :  { %145 = vmatpush1.bf16.msra.mxu0 %v502_v17  ;;  %399 = vmatprep.subr.bf16.mxu1 %v524_v27 }
  0x18   :  { %146 = vmatprep.subr.bf16.mxu0 %v503_v20 }
  0x1a   :  { %400 = vmatpush1.bf16.msra.mxu1 %v526_v28 }
  0x1b   :  { %147 = vmatpush1.bf16.msra.mxu0 %v505_v21  ;;  %401 = vmatprep.subr.bf16.mxu1 %v527_v30 }
  0x1c   :  { %148 = vmatprep.subr.bf16.mxu0 %v506_v24 }
  0x1e   :  { %402 = vmatpush1.bf16.msra.mxu1 %v529_v31 }
  0x1f   :  { %149 = vmatpush1.bf16.msra.mxu0 %v508_v25  ;;  %403 = vmatprep.subr.bf16.mxu1 %v530_v32 }
  0x22   :  { %167 = vmatmul.mubr.bf16.vlgmr.msra.gmra.mxu0 %v25_v29  ;;  %404 = vmatpush1.bf16.msra.mxu1 %v532_v33 }
  0x23   :  { %405 = vmatprep.subr.bf16.mxu1 %v533_v34 }
  0x26   :  { %406 = vmatpush2.bf16.msra.mxu1 %v535_v35 }
  0x27   :  { %407 = vmatprep.subr.bf16.mxu1 %v536_v36 }
  0x2a   :  { %408 = vmatpush2.bf16.msra.mxu1 %v538_v37 }
  0x2b   :  { %409 = vmatprep.subr.bf16.mxu1 %v539_v38 }
  0x2e   :  { %410 = vmatpush2.bf16.msra.mxu1 %v541_v39 }
  0x2f   :  { %411 = vmatprep.subr.bf16.mxu1 %v542_v40 }
  0x32   :  { %412 = vmatpush2.bf16.msra.mxu1 %v544_v41 }
  0x33   :  { %413 = vmatprep.subr.bf16.mxu1 %v545_v42 }
  0x36   :  { %414 = vmatpush2.bf16.msra.mxu1 %v547_v43 }
  0x37   :  { %415 = vmatprep.subr.bf16.mxu1 %v548_v44 }
  0x3a   :  { %416 = vmatpush2.bf16.msra.mxu1 %v550_v45 }
  0x3b   :  { %417 = vmatprep.subr.bf16.mxu1 %v551_v46 }
  0x3e   :  { %418 = vmatpush2.bf16.msra.mxu1 %v553_v47 }
  0x3f   :  { %419 = vmatprep.subr.bf16.mxu1 %v554_v48 }
  0x42   :  { %420 = vmatpush2.bf16.msra.mxu1 %v556_v49 }
  0xe2   :  { %v168_v57 = vpop.f32.mrf.mxu0 }
  0xe3   :  { %v169_v59 = vadd.f32 %v168_v57, %v47_v55 }
  0xe4   :  { %v170_v60 = vpop.f32.mrf.mxu0 }
  0xe5   :  { %vm176_vm0 = vcmp.gt.f32.partialorder %v169_v59, 0.0  ;;  %v179_v61 = vmul.f32 %v178_v58, %v169_v59  ;;  %v171_v62 = vadd.f32 %v170_v60, %v51_v56 }
  0xe6   :  { %v172_v63 = vpop.f32.mrf.mxu0 }
  0xe7   :  { %vm177_vm1 = vcmp.gt.f32.partialorder %v171_v62, 0.0  ;;  %v180_v0 = vmul.f32 %v178_v58, %v171_v62  ;;  %v181_v2 = vsel %vm176_vm0, %v169_v59, %v179_v61 }
  0xe8   :  { %v173_v1 = vpop.f32.mrf.mxu0  ;;  %v183_v5 = vpack.c.bf16 %v181_v2, %v181_v2 }
  0xe9   :  { %v182_v3 = vsel %vm177_vm1, %v171_v62, %v180_v0 }
  0xea   :  { %v184_v4 = vpack.c.bf16 %v182_v3, %v182_v3 }
  0xec   :  { %421 = vmatprep.mubr.bf16.mxu1 %v184_v4 }
  0xed   :  { %422 = vmatmul.mubr.bf16.vlgmr.msra.gmra.mxu1 %v183_v5 }
 0x1ad   :  { %v423_v9 = vpop.f32.mrf.mxu1 }
 0x1ae   :  { %v424_v10 = vadd.f32 %v423_v9, %v222_v7 }
 0x1af   :  { %v425_v11 = vpop.f32.mrf.mxu1 }
 0x1b0   :  { %430 = vst [vmem:[%s761_s6] sm:$0xff] %v424_v10  ;;  %v426_v12 = vadd.f32 %v425_v11, %v226_v8 }
 0x1b1   :  { %v427_v13 = vpop.f32.mrf.mxu1 }
 0x1b2   :  { %431 = vst [vmem:[%s761_s6 + $0x8] sm:$0xff] %v426_v12 }
 0x1b3   :  { %v428_v14 = vpop.f32.mrf.mxu1 }

</bundles_post_ra>
